<compile_context>
chip_gen: v6e
topology: v6e:2x2x1
jax: 0.10.0
libtpu: 0.0.40
codegen_flags: <defaults>
</compile_context>

<pallas_src>
import math
import functools

import jax
import jax.numpy as jnp
from jax import lax
from jax.experimental import pallas as pl
from jax.experimental.pallas import tpu as pltpu

_VMEM_LIMIT = 48 * 1024 * 1024  # explicit scoped-VMEM budget (fits v7x 64 MiB)


def _pick_tile(dim, target, align):
    """Largest tile <= target that divides `dim` and is a multiple of `align`.
    Falls back to the full dim, which is always a legal block size."""
    if dim <= target:
        return dim
    t = (target // align) * align
    while t >= align:
        if dim % t == 0:
            return t
        t -= align
    return dim


# ----------------------------------------------------------------------------
# Pallas kernel: tiled dense linear layer  y = x @ w + b
# ----------------------------------------------------------------------------
def _linear_kernel(x_ref, w_ref, b_ref, o_ref, acc_ref):
    k = pl.program_id(2)

    @pl.when(k == 0)
    def _():
        acc_ref[...] = jnp.zeros_like(acc_ref)

    acc_ref[...] += jnp.dot(x_ref[...], w_ref[...],
                            preferred_element_type=jnp.float32)

    @pl.when(k == pl.num_programs(2) - 1)
    def _():
        o_ref[...] = (acc_ref[...] +
                      b_ref[...].astype(jnp.float32)).astype(o_ref.dtype)


def linear(x, w_t, b, *, tm=256, tn=256, tk=512):
    """x: [M, K], w_t: [K, N] (already transposed), b: [N] -> [M, N]."""
    M, K = x.shape
    _, N = w_t.shape
    tm = _pick_tile(M, tm, 8)     # sublane-aligned
    tn = _pick_tile(N, tn, 128)   # lane-aligned
    tk = _pick_tile(K, tk, 128)   # lane-aligned (x block) & sublane (w block)
    b2 = b.reshape(1, N)
    grid = (M // tm, N // tn, K // tk)
    return pl.pallas_call(
        _linear_kernel,
        out_shape=jax.ShapeDtypeStruct((M, N), x.dtype),
        grid_spec=pltpu.PrefetchScalarGridSpec(
            num_scalar_prefetch=0,
            grid=grid,
            in_specs=[
                pl.BlockSpec((tm, tk), lambda i, j, k: (i, k)),
                pl.BlockSpec((tk, tn), lambda i, j, k: (k, j)),
                pl.BlockSpec((1, tn), lambda i, j, k: (0, j)),
            ],
            out_specs=pl.BlockSpec((tm, tn), lambda i, j, k: (i, j)),
            scratch_shapes=[pltpu.VMEM((tm, tn), jnp.float32)],
        ),
        compiler_params=pltpu.CompilerParams(
            dimension_semantics=("parallel", "parallel", "arbitrary"),
            vmem_limit_bytes=_VMEM_LIMIT),
    )(x, w_t, b2)


# ----------------------------------------------------------------------------
# Pallas kernel: flash attention forward (online softmax over kv blocks)
# ----------------------------------------------------------------------------
def _flash_kernel(q_ref, k_ref, v_ref, o_ref, m_sc, l_sc, acc_sc, *,
                  scale, kv_axis):
    ki = pl.program_id(kv_axis)

    @pl.when(ki == 0)
    def _():
        m_sc[...] = jnp.full_like(m_sc, -jnp.inf)
        l_sc[...] = jnp.zeros_like(l_sc)
        acc_sc[...] = jnp.zeros_like(acc_sc)

    dtype = q_ref.dtype
    # Scale q (block_q x hd) once instead of the (block_q x block_k) scores.
    q = (q_ref[...].astype(jnp.float32) * scale).astype(dtype)
    k = k_ref[...]

    # 2-D QK^T on the MXU: contract over head_dim -> [block_q, block_k] f32.
    s = lax.dot_general(q, k, (((1,), (1,)), ((), ())),
                        preferred_element_type=jnp.float32)

    m_prev = m_sc[...]
    m_new = jnp.maximum(m_prev, s.max(axis=-1, keepdims=True))
    alpha = jnp.exp(m_prev - m_new)
    p = jnp.exp(s - m_new)

    l_sc[...] = alpha * l_sc[...] + p.sum(axis=-1, keepdims=True)
    acc_sc[...] = alpha * acc_sc[...] + jnp.dot(
        p.astype(v_ref.dtype), v_ref[...], preferred_element_type=jnp.float32)
    m_sc[...] = m_new

    @pl.when(ki == pl.num_programs(kv_axis) - 1)
    def _():
        o_ref[...] = (acc_sc[...] *
                      pl.reciprocal(l_sc[...], approx=True)).astype(o_ref.dtype)


def flash_attention(qkv, num_heads, *, block_q=256, block_k=256):
    """qkv: fused projection output [B, S, 3H] -> attention output [B, S, H].

    Non-causal, no mask, dropout=0 (module defaults).  When head_dim is a
    multiple of 128, per-head q/k/v tiles are addressed directly inside the
    fused slab via the BlockSpec index_map (head split/merge is free, blocks
    are lane-dense).  Otherwise falls back to an explicit [B*nh, S, hd] layout.
    """
    B, S, H3 = qkv.shape
    H = H3 // 3
    hd = H // num_heads
    scale = 1.0 / math.sqrt(hd)
    block_q = _pick_tile(S, block_q, 8)
    block_k = _pick_tile(S, block_k, 8)
    scratch = [
        pltpu.VMEM((block_q, 1), jnp.float32),    # running max m_i
        pltpu.VMEM((block_q, 1), jnp.float32),    # running denom l_i
        pltpu.VMEM((block_q, hd), jnp.float32),   # output accumulator
    ]

    if hd % 128 == 0:
        nh = num_heads
        kernel = functools.partial(_flash_kernel, scale=scale, kv_axis=3)
        grid = (B, nh, S // block_q, S // block_k)
        return pl.pallas_call(
            kernel,
            out_shape=jax.ShapeDtypeStruct((B, S, H), qkv.dtype),
            grid_spec=pltpu.PrefetchScalarGridSpec(
                num_scalar_prefetch=0,
                grid=grid,
                in_specs=[
                    # q / k / v are hd-wide column chunks of the same slab.
                    pl.BlockSpec((None, block_q, hd),
                                 lambda b, h, qi, ki: (b, qi, h)),
                    pl.BlockSpec((None, block_k, hd),
                                 lambda b, h, qi, ki: (b, ki, nh + h)),
                    pl.BlockSpec((None, block_k, hd),
                                 lambda b, h, qi, ki: (b, ki, 2 * nh + h)),
                ],
                out_specs=pl.BlockSpec((None, block_q, hd),
                                       lambda b, h, qi, ki: (b, qi, h)),
                scratch_shapes=scratch,
            ),
            compiler_params=pltpu.CompilerParams(
                dimension_semantics=("parallel", "parallel", "parallel",
                                     "arbitrary"),
                vmem_limit_bytes=_VMEM_LIMIT),
        )(qkv, qkv, qkv)

    # Fallback for head_dim not a multiple of 128: [B*nh, S, hd] layout.
    def split(t):
        return (t.reshape(B, S, num_heads, hd)
                 .transpose(0, 2, 1, 3)
                 .reshape(B * num_heads, S, hd))

    q = split(qkv[:, :, :H])
    k = split(qkv[:, :, H:2 * H])
    v = split(qkv[:, :, 2 * H:])
    kernel = functools.partial(_flash_kernel, scale=scale, kv_axis=2)
    o = pl.pallas_call(
        kernel,
        out_shape=jax.ShapeDtypeStruct((B * num_heads, S, hd), qkv.dtype),
        grid_spec=pltpu.PrefetchScalarGridSpec(
            num_scalar_prefetch=0,
            grid=(B * num_heads, S // block_q, S // block_k),
            in_specs=[
                pl.BlockSpec((None, block_q, hd), lambda b, qi, ki: (b, qi, 0)),
                pl.BlockSpec((None, block_k, hd), lambda b, qi, ki: (b, ki, 0)),
                pl.BlockSpec((None, block_k, hd), lambda b, qi, ki: (b, ki, 0)),
            ],
            out_specs=pl.BlockSpec((None, block_q, hd),
                                   lambda b, qi, ki: (b, qi, 0)),
            scratch_shapes=scratch,
        ),
        compiler_params=pltpu.CompilerParams(
            dimension_semantics=("parallel", "parallel", "arbitrary"),
            vmem_limit_bytes=_VMEM_LIMIT),
    )(q, k, v)
    return (o.reshape(B, num_heads, S, hd)
             .transpose(0, 2, 1, 3)
             .reshape(B, S, H))


# ----------------------------------------------------------------------------
# FlashAttentionLayer forward (wrapper glue)
# ----------------------------------------------------------------------------
def init_params(key, hidden_size):
    """PyTorch init: normal(0, 0.02) weights, zero bias; Linear layout [out, in]."""
    ks = jax.random.split(key, 4)

    def w(k):
        return 0.02 * jax.random.normal(k, (hidden_size, hidden_size),
                                        jnp.float32)

    zb = jnp.zeros((hidden_size,), jnp.float32)
    return {
        "q_w": w(ks[0]), "q_b": zb,
        "k_w": w(ks[1]), "k_b": zb,
        "v_w": w(ks[2]), "v_b": zb,
        "o_w": w(ks[3]), "o_b": zb,
    }


def flash_attention_layer(params, hidden_states, num_heads):
    """Forward pass of FlashAttentionLayer (mask=None, dropout=0, non-causal)."""
    B, S, H = hidden_states.shape
    x2d = hidden_states.reshape(B * S, H)

    # Fused QKV projection: one Pallas matmul over the activations; the weight
    # concat/transpose only touches O(H^2) parameter data.
    qkv_w = jnp.concatenate([params["q_w"], params["k_w"], params["v_w"]],
                            axis=0)
    qkv_b = jnp.concatenate([params["q_b"], params["k_b"], params["v_b"]],
                            axis=0)
    qkv = linear(x2d, qkv_w.T, qkv_b).reshape(B, S, 3 * H)

    o = flash_attention(qkv, num_heads)                        # [B, S, H]

    out = linear(o.reshape(B * S, H), params["o_w"].T, params["o_b"])
    return out.reshape(B, S, H)


# ----------------------------------------------------------------------------
# Pure-JAX reference for correctness check
# ----------------------------------------------------------------------------
def reference(params, hidden_states, num_heads):
    B, S, H = hidden_states.shape
    hd = H // num_heads
    q = (hidden_states @ params["q_w"].T + params["q_b"]).reshape(
        B, S, num_heads, hd)
    k = (hidden_states @ params["k_w"].T + params["k_b"]).reshape(
        B, S, num_heads, hd)
    v = (hidden_states @ params["v_w"].T + params["v_b"]).reshape(
        B, S, num_heads, hd)
    scale = 1.0 / math.sqrt(hd)
    s = jnp.einsum("bqhd,bkhd->bhqk", q, k) * scale
    p = jax.nn.softmax(s, axis=-1)
    o = jnp.einsum("bhqk,bkhd->bqhd", p, v).reshape(B, S, H)
    return o @ params["o_w"].T + params["o_b"]


if __name__ == "__main__":
    B, S, H, NH = 2, 128, 256, 2      # head_dim = 128 -> lane-dense fused path

    key = jax.random.PRNGKey(0)
    kp, kx = jax.random.split(key)
    params = init_params(kp, H)
    x = jax.random.normal(kx, (B, S, H), jnp.float32)

    out = jax.block_until_ready(flash_attention_layer(params, x, NH))
    ref = jax.block_until_ready(reference(params, x, NH))

    assert out.shape == (B, S, H)
    max_err = float(jnp.max(jnp.abs(out - ref)))
    assert jnp.allclose(out, ref, atol=2e-2, rtol=2e-2), max_err
    print("KERNEL_OK")
</pallas_src>

<mosaic_0001>
module attributes {stable_mosaic.version = 11 : i64} {
  func.func @_linear_kernel(%arg0: i32, %arg1: i32, %arg2: i32, %arg3: memref<256x256xf32, #tpu.memory_space<vmem>>, %arg4: memref<256x256xf32, #tpu.memory_space<vmem>>, %arg5: memref<1x256xf32, #tpu.memory_space<vmem>>, %arg6: memref<256x256xf32, #tpu.memory_space<vmem>>, %arg7: memref<256x256xf32, #tpu.memory_space<vmem>>) attributes {dimension_semantics = [#tpu.dimension_semantics<parallel>, #tpu.dimension_semantics<parallel>, #tpu.dimension_semantics<arbitrary>], iteration_bounds = array<i64: 1, 3, 1>, scalar_prefetch = 0 : i64, scratch_operands = 1 : i64, tpu.core_type = #tpu.core_type<tc>, window_params = [{transform_indices = @transform_0, window_bounds = array<i64: 256, 256>}, {transform_indices = @transform_1, window_bounds = array<i64: 256, 256>}, {transform_indices = @transform_2, window_bounds = array<i64: 1, 256>}, {transform_indices = @transform_3, window_bounds = array<i64: 256, 256>}]} {
    %c0_i32 = arith.constant 0 : i32
    %0 = arith.cmpi eq, %arg2, %c0_i32 : i32
    %1 = arith.extui %0 : i1 to i32
    %c0_i32_0 = arith.constant 0 : i32
    %2 = arith.cmpi ne, %1, %c0_i32_0 : i32
    scf.if %2 {
      %cst_10 = arith.constant 0.000000e+00 : f32
      %12 = vector.broadcast %cst_10 : f32 to vector<256x256xf32>
      %c0_11 = arith.constant 0 : index
      %c0_12 = arith.constant 0 : index
      %13 = vector.load %arg7[%c0_11, %c0_12] : memref<256x256xf32, #tpu.memory_space<vmem>>, vector<256x256xf32>
      tpu.vector_store %arg7[%c0_11, %c0_12], %12 {strides = array<i32>} : memref<256x256xf32, #tpu.memory_space<vmem>>, vector<256x256xf32>,
    } else {
    }
    %c0 = arith.constant 0 : index
    %c0_1 = arith.constant 0 : index
    %3 = vector.load %arg7[%c0, %c0_1] : memref<256x256xf32, #tpu.memory_space<vmem>>, vector<256x256xf32>
    %c0_2 = arith.constant 0 : index
    %c0_3 = arith.constant 0 : index
    %4 = vector.load %arg3[%c0_2, %c0_3] : memref<256x256xf32, #tpu.memory_space<vmem>>, vector<256x256xf32>
    %c0_4 = arith.constant 0 : index
    %c0_5 = arith.constant 0 : index
    %5 = vector.load %arg4[%c0_4, %c0_5] : memref<256x256xf32, #tpu.memory_space<vmem>>, vector<256x256xf32>
    %cst = arith.constant dense<0.000000e+00> : vector<256x256xf32>
    %6 = tpu.matmul %4, %5, %cst {dimension_numbers = #tpu.dot_dimension_numbers<[1], [0], [0], [1], [0, 0, 1, 1], [], []>} : vector<256x256xf32>, vector<256x256xf32>, vector<256x256xf32> -> vector<256x256xf32>
    %7 = arith.addf %3, %6 : vector<256x256xf32>
    %c0_6 = arith.constant 0 : index
    %c0_7 = arith.constant 0 : index
    %8 = vector.load %arg7[%c0_6, %c0_7] : memref<256x256xf32, #tpu.memory_space<vmem>>, vector<256x256xf32>
    tpu.vector_store %arg7[%c0_6, %c0_7], %7 {strides = array<i32>} : memref<256x256xf32, #tpu.memory_space<vmem>>, vector<256x256xf32>,
    %c0_i32_8 = arith.constant 0 : i32
    %9 = arith.cmpi eq, %arg2, %c0_i32_8 : i32
    %10 = arith.extui %9 : i1 to i32
    %c0_i32_9 = arith.constant 0 : i32
    %11 = arith.cmpi ne, %10, %c0_i32_9 : i32
    scf.if %11 {
      %c0_10 = arith.constant 0 : index
      %c0_11 = arith.constant 0 : index
      %12 = vector.load %arg7[%c0_10, %c0_11] : memref<256x256xf32, #tpu.memory_space<vmem>>, vector<256x256xf32>
      %c0_12 = arith.constant 0 : index
      %c0_13 = arith.constant 0 : index
      %13 = vector.load %arg5[%c0_12, %c0_13] : memref<1x256xf32, #tpu.memory_space<vmem>>, vector<1x256xf32>
      %14 = vector.broadcast %13 : vector<1x256xf32> to vector<256x256xf32>
      %15 = arith.addf %12, %14 : vector<256x256xf32>
      %c0_14 = arith.constant 0 : index
      %c0_15 = arith.constant 0 : index
      %16 = vector.load %arg6[%c0_14, %c0_15] : memref<256x256xf32, #tpu.memory_space<vmem>>, vector<256x256xf32>
      tpu.vector_store %arg6[%c0_14, %c0_15], %15 {strides = array<i32>} : memref<256x256xf32, #tpu.memory_space<vmem>>, vector<256x256xf32>,
    } else {
    }
    return
  }
  func.func @transform_0(%arg0: i32, %arg1: i32, %arg2: i32) -> (i32, i32) {
    %c0_i32 = arith.constant 0 : i32
    return %arg0, %arg2 : i32, i32
  }
  func.func @transform_1(%arg0: i32, %arg1: i32, %arg2: i32) -> (i32, i32) {
    %c0_i32 = arith.constant 0 : i32
    return %arg2, %arg1 : i32, i32
  }
  func.func @transform_2(%arg0: i32, %arg1: i32, %arg2: i32) -> (i32, i32) {
    %c0_i32 = arith.constant 0 : i32
    %c0_i32_0 = arith.constant 0 : i32
    return %c0_i32, %arg1 : i32, i32
  }
  func.func @transform_3(%arg0: i32, %arg1: i32, %arg2: i32) -> (i32, i32) {
    %c0_i32 = arith.constant 0 : i32
    return %arg0, %arg1 : i32, i32
  }
}

</mosaic_0001>

<bundles_post_ra>
// kernel: tpu_custom_call.1
= control target key start
LH: loop header
LB: loop body
LE: loop exit
PB: predicated region body
PF: predicated region fallthrough
CT: control target
= control target key end

     0   :  { %s2069_s0 = inlined_call_operand.hbm [shape: f32[256,256], index: 0, kind: input, shape index: {}]   ;;  %s2070_s1 = inlined_call_operand.hbm [shape: f32[256,768], index: 1, kind: input, shape index: {}]   ;;  %s2071_s2 = inlined_call_operand.hbm [shape: f32[1,768], index: 2, kind: input, shape index: {}]   ;;  %s2072_s3 = inlined_call_operand.hbm [shape: f32[256,768], index: 3, kind: output, shape index: {}]  }
   0x1   :  { %2078 = sst [smem:[#allocation13_spill]] %s2070_s1 }
   0x2   :  { %8 = vsyncpa [#allocation4], 0 }
   0x3   :  { %9 = vsyncpa [#allocation7], 0 }
   0x4   :  { %11 = vsyncpa [#allocation7 + $0x1], 0 }
   0x5   :  { %12 = vsyncpa [#allocation5], 0 }
   0x6   :  { %14 = vsyncpa [#allocation5 + $0x1], 0  ;;  %s1651_s12 = smov 0   ;;  %s1653_s13 = smov 0  }
   0x7   :  { %s1655_s14 = smov 0   ;;  %s1657_s15 = smov 0  }
   0x8   :  { %s1659_s16 = smov 0   ;;  %s1661_s17 = smov 0  }
   0x9 LB: > { %s35_s18 = sadd.s32 1, %s1615_s16  ;;  %s76_s19 = sadd.s32 1, %s1607_s14  ;;  %s1619_s17 = sphi %s1661_s17, %s20_s17   ;;  %s1615_s16 = sphi %s1659_s16, %s2098_s16   ;;  %s1611_s15 = sphi %s1657_s15, %s2097_s15   ;;  %s1607_s14 = sphi %s1655_s14, %s2096_s14   ;;  %s1603_s13 = sphi %s1653_s13, %s2095_s13   ;;  %s1599_s12 = sphi %s1651_s12, %s2094_s12  }
   0xa   : > { %p37_p0 = scmp.ge.s32.totalorder %s35_s18, 3  ;;  %p83_p1 = scmp.ne.s32.totalorder %s1607_s14, %s1603_s13 }
   0xb   : > { %p84_p2 = scmp.eq.s32.totalorder %s1619_s17, 0  ;;  %p1395_p5 = scmp.lt.s32.totalorder %s1619_s17, 3 }
   0xc   : > { %s2100_s18 = smov (%p37_p0, %s35_s18), 0  ;;  %s186_s22 = sand.u32 1, %s1619_s17  }
   0xd   : > { %p1691_p3 = por %p84_p2, %p83_p1  ;;  %s72_s21 = ssub.s32 %s1615_s16, %s2100_s18 }
   0xe   : > { %p74_p4 = scmp.eq.s32.totalorder %s72_s21, 0  ;;  %s188_s23 = sand.u32 1, %s1607_s14  }
   0xf   : > { %s1286_s25 = sshll.u32 %s188_s23, 9  ;;  %s1302_s26 = sshll.u32 %s1615_s16, 8 }
  0x10   : > { %s1701_s24 = scalar_select %p74_p4, %s1607_s14, %s76_s19  }
  0x11   : > { %s2080_s1 = sld [smem:[#allocation13_spill]]  ;;  %s190_s30 = scalar_lea.vmem [#allocation6], %s1286_s25 }
  0x12   : > { %s200_s4 = sshll.u32 %s190_s30, 4  ;;  %p1711_p6 = pnand %p1395_p5, %p1691_p3  ;;  %s201_s4 = int_to_ptr.vmem [resolvable:$true] %s200_s4 }
  0x13   : > { %s1715_s6 = scalar_lea.sflag [#allocation7], %s186_s22  ;;  %s1466_s7 = scalar_lea.vmem %s201_s4, 8192 }
  0x14   : > { %p1455_p7 = pneg %p1711_p6  ;;  %p1467_p8 = scmp.ne.s32.totalorder %s201_s4, %s1466_s7 }
  0x15   : > { %s1621_s8 = smov [#allocation6]  }
  0x16   : > { %p1469_p9 = pnand %p1467_p8, %p1455_p7  ;;  %s1471_s9 = sshll.u32 %s1621_s8, 4  ;;  %s1472_s9 = int_to_ptr.vmem [resolvable:$false] %s1471_s9 }
  0x17   : > { %s199_s29 = scalar_lea.hbm %s2080_s1, %s1302_s26  ;;  %s1473_s10 = scalar_lea.vmem %s1472_s9, 16384 }
  0x18   : > { %p1470_p10 = pneg %p1469_p9  ;;  %p1474_p11 = scmp.lt.s32.totalorder %s201_s4, %s1472_s9 }
  0x19   : > { %p1475_p12 = scmp.lt.s32.totalorder %s1473_s10, %s1466_s7 }
  0x1b   : > { %p1476_p13 = por %p1475_p12, %p1474_p11 }
  0x1d   : > { %p1477_p0 = pnand %p1476_p13, %p1470_p10 }
  0x1f   : > { %1480 = shalt.err (!%p1477_p0)
}
  0x20   : > { %s1622_s11 = smov 768   ;;  %s2073_s19 = smov 256  }
  0x21   : > { %s2074_s20 = smov 16   ;;  %s1728_s21 = sadd.s32 4294967295, %s1619_s17  }
  0x22   : > { %1386 = dma.hbm_to_vmem [thread:$0]  (!%p1711_p6), %s199_s29, 8192, %s201_s4, %s1715_s6, %s1622_s11, %s2073_s19, %s2074_s20  }
  0x23   : > { %s1282_s22 = sadd.s32 4294967294, %s1619_s17   ;;  %p89_p2 = scmp.ne.s32.totalorder %s1603_s13, %s1599_s12 }
  0x24   : > { %p2076_p3 = scmp.eq.s32.totalorder %s1728_s21, 0  ;;  %p141_p4 = scmp.eq.s32.totalorder %s1728_s21, 2 }
  0x25   : > { %p147_p5 = scmp.eq.s32.totalorder %s1282_s22, 2  ;;  %p1283_p9 = scmp.ge.s32.totalorder %s1619_s17, 1 }
  0x26   : > { %p1737_p8 = por %p2076_p3, %p89_p2  ;;  %p1745_p10 = por %p141_p4, %p83_p1 }
  0x27   : > { %p1749_p11 = por %p147_p5, %p89_p2  ;;  %p154_p12 = scmp.lt.s32.totalorder %s1619_s17, 4 }
  0x28   : > { %s2082_s25 = scalar_select %p1737_p8, 1, 0 }
  0x29   : > { %s2083_s26 = scalar_select %p1745_p10, 1, 0 }
  0x2a   : > { %s2084_s27 = scalar_select %p1749_p11, 1, 0 }
  0x2b   : > { %s1289_s28 = sshll.u32 %s188_s23, 1  ;;  %p1756_p13 = pnand %p1283_p9, %p154_p12 }
  0x2c   : > { %s1625_s30 = smov [#allocation3]   ;;  %s1303_s7 = sshll.u32 %s1615_s16, 5 }
  0x2d   : > { %s172_s4 = sshll.u32 %s1625_s30, 4  ;;  %p1379_p1 = pneg %p1756_p13  ;;  %s1760_s4 = int_to_ptr.vmem [resolvable:$true] %s172_s4 }
  0x2e   : > { %s220_s10 = scalar_lea.hbm %s2071_s2, %s1303_s7  ;;  %s214_s11 = scalar_lea.vmem [#allocation8], %s1289_s28 }
  0x2f   : > { %s222_s22 = sshll.u32 %s214_s11, 4  ;;  %p1770_p0 = pnand %p1379_p1, %p2076_p3  ;;  %s223_s22 = int_to_ptr.vmem [resolvable:$true] %s222_s22 }
  0x30   : > { %s1494_s19 = scalar_lea.vmem %s223_s22, 32  ;;  %s1626_s30 = smov [#allocation8]  }
  0x31   : > { %p1495_p2 = scmp.ne.s32.totalorder %s223_s22, %s1494_s19  ;;  %s1499_s20 = sshll.u32 %s1626_s30, 4  ;;  %s1500_s20 = int_to_ptr.vmem [resolvable:$false] %s1499_s20 }
  0x32   : > { %s1501_s1 = scalar_lea.vmem %s1500_s20, 64  ;;  %p1502_p9 = scmp.lt.s32.totalorder %s223_s22, %s1500_s20 }
  0x33   : > { %p1497_p4 = pnand %p1495_p2, %p1455_p7  ;;  %p1503_p12 = scmp.lt.s32.totalorder %s1501_s1, %s1494_s19 }
  0x35   : > { %p1498_p5 = pneg %p1497_p4  ;;  %p1504_p11 = por %p1503_p12, %p1502_p9 }
  0x37   : > { %p1505_p10 = pnand %p1504_p11, %p1498_p5 }
  0x39   : > { %1508 = shalt.err (!%p1505_p10)
}
  0x3a   : > { %1389 = dma.hbm_to_vmem [thread:$0]  (!%p1711_p6), %s220_s10, 32, %s223_s22, %s1715_s6  }
  0x3b   : > { %p1511_p7 = pneg %p1770_p0  ;;  %s1520_s28 = scalar_lea.vmem %s1760_s4, 8192 }
  0x3c   : > { %p1521_p1 = scmp.ne.s32.totalorder %s1760_s4, %s1520_s28  ;;  %p1528_p3 = scmp.lt.s32.totalorder %s1760_s4, %s1760_s4 }
  0x3d   : > { %p1529_p8 = scmp.lt.s32.totalorder %s1520_s28, %s1520_s28 }
  0x3e   : > { %p1523_p2 = pnand %p1521_p1, %p1511_p7 }
  0x3f   : > { %p1530_p9 = por %p1529_p8, %p1528_p3 }
  0x40   : > { %p1524_p4 = pneg %p1523_p2 }
  0x42   : > { %p1531_p11 = pnand %p1530_p9, %p1524_p4 }
  0x44   : > { %1534 = shalt.err (!%p1531_p11)
}
  0x45   : > { %s2087_s1 = smov 16   ;;  %s2088_s5 = smov 256  }
  0x46   : > { %1382 = dma.hbm_to_vmem [thread:$0]  (!%p1770_p0), %s2069_s0, 8192, %s1760_s4, [#allocation4], %s2088_s5, %s2088_s5, %s2087_s1  }
  0x47   : > { %231 = sbr.rel (%p1756_p13) target bundleno = 420 (0x1a4), region = 32  ;;  %p2089_p6 = scmp.eq.s32.totalorder (!%p1756_p13), %s1728_s21, 0 }
  0x4c   : > { %1586 = dma.done.wait (%p2089_p6), [#allocation4], 8192   ;;  %p2090_p3 = pmov %p2089_p6 }
  0x4d   : > { %s237_s20 = sand.u32 1, %s1728_s21   ;;  %s1803_s7 = sand.u32 1, %s1603_s13  }
  0x4e   : > { %1588 = vsyncadd (%p2090_p3), [#allocation4], 4294959104  ;;  %s1294_s8 = sshll.u32 %s1803_s7, 9  ;;  %s238_s9 = scalar_lea.sflag [#allocation7], %s237_s20 }
  0x4f   : > { %s1808_s4 = scalar_lea.vmem [#allocation6], %s1294_s8  ;;  %p2091_p8 = scmp.ne.s32.totalorder %s2082_s25, 0 }
  0x51   : > { %1590 = dma.done.wait (%p2091_p8), %s238_s9, 8224  }
  0x52   : > { %1592 = vsyncadd (%p2091_p8), %s238_s9, 4294959072  ;;  %v512_v0 = vld [vmem:[%s1808_s4 + $0xf8] sm:$0xff]  ;;  %v511_v1 = vld [vmem:[%s1808_s4 + $0xf0] sm:$0xff]  ;;  %s1295_s21 = sshll.u32 %s1803_s7, 1  ;;  %s1887_s29 = scalar_lea.vmem [#allocation9], %s1294_s8 }
  0x53   : > { %v510_v2 = vld [vmem:[%s1808_s4 + $0xe8] sm:$0xff]  ;;  %545 = vmatprep.subr.mxu0 %v512_v0  ;;  %1305 = vmatprep.subr.mxu1 %v512_v0  ;;  %v509_v3 = vld [vmem:[%s1808_s4 + $0xe0] sm:$0xff]  ;;  %v508_v4 = vld [vmem:[%s1808_s4 + $0xd8] sm:$0xff]  ;;  %s250_s25 = scalar_lea.vmem [#allocation8], %s1295_s21  ;;  %s1304_s10 = sshll.u32 %s1611_s15, 8 }
  0x54   : > { %546 = vmatpush1.msra.mxu0 %v511_v1  ;;  %1337 = vmatpush1.msra.mxu1 %v511_v1  ;;  %v507_v5 = vld [vmem:[%s1808_s4 + $0xd0] sm:$0xff]  ;;  %v506_v6 = vld [vmem:[%s1808_s4 + $0xc8] sm:$0xff]  ;;  %v505_v7 = vld [vmem:[%s1808_s4 + $0xc0] sm:$0xff]  ;;  %s1154_s11 = sshll.u32 %s1887_s29, 4  ;;  %s2014_s23 = scalar_lea.hbm %s2072_s3, %s1304_s10  ;;  %s2016_s11 = int_to_ptr.vmem [resolvable:$true] %s1154_s11 }
  0x55   : > { %547 = vmatprep.subr.mxu0 %v510_v2  ;;  %1306 = vmatprep.subr.mxu1 %v510_v2  ;;  %v504_v8 = vld [vmem:[%s1808_s4 + $0xb8] sm:$0xff]  ;;  %v503_v9 = vld [vmem:[%s1808_s4 + $0xb0] sm:$0xff]  ;;  %v502_v10 = vld [vmem:[%s1808_s4 + $0xa8] sm:$0xff]  ;;  %s1138_s30 = scalar_lea.sflag [#allocation5], %s1803_s7  ;;  %s1535_s28 = scalar_lea.vmem %s2016_s11, 8192 }
  0x56   : > { %548 = vmatpush1.msra.mxu0 %v509_v3  ;;  %1338 = vmatpush1.msra.mxu1 %v509_v3  ;;  %v501_v11 = vld [vmem:[%s1808_s4 + $0xa0] sm:$0xff]  ;;  %v500_v12 = vld [vmem:[%s1808_s4 + $0x98] sm:$0xff]  ;;  %v499_v13 = vld [vmem:[%s1808_s4 + $0x90] sm:$0xff]  ;;  %p1536_p10 = scmp.ne.s32.totalorder %s2016_s11, %s1535_s28  ;;  %p2092_p13 = scmp.ne.s32.totalorder %s2083_s26, 0 }
  0x57   : > { %549 = vmatprep.subr.mxu0 %v508_v4  ;;  %1307 = vmatprep.subr.mxu1 %v508_v4  ;;  %v498_v14 = vld [vmem:[%s1808_s4 + $0x88] sm:$0xff]  ;;  %v497_v15 = vld [vmem:[%s1808_s4 + $0x80] sm:$0xff]  ;;  %v496_v16 = vld [vmem:[%s1808_s4 + $0x78] sm:$0xff]  ;;  %s1627_s1 = smov [#allocation9]  }
  0x58   : > { %550 = vmatpush1.msra.mxu0 %v507_v5  ;;  %1339 = vmatpush1.msra.mxu1 %v507_v5  ;;  %v495_v17 = vld [vmem:[%s1808_s4 + $0x70] sm:$0xff]  ;;  %v494_v18 = vld [vmem:[%s1808_s4 + $0x68] sm:$0xff]  ;;  %v493_v19 = vld [vmem:[%s1808_s4 + $0x60] sm:$0xff]  ;;  %p1537_p0 = pnand %p1536_p10, %p2092_p13  ;;  %s1539_s5 = sshll.u32 %s1627_s1, 4  ;;  %s1540_s5 = int_to_ptr.vmem [resolvable:$false] %s1539_s5 }
  0x59   : > { %551 = vmatprep.subr.mxu0 %v506_v6  ;;  %1308 = vmatprep.subr.mxu1 %v506_v6  ;;  %v492_v20 = vld [vmem:[%s1808_s4 + $0x58] sm:$0xff]  ;;  %v491_v21 = vld [vmem:[%s1808_s4 + $0x50] sm:$0xff]  ;;  %v490_v22 = vld [vmem:[%s1808_s4 + $0x48] sm:$0xff]  ;;  %s1541_s19 = scalar_lea.vmem %s1540_s5, 16384  ;;  %p1542_p12 = scmp.lt.s32.totalorder %s2016_s11, %s1540_s5 }
  0x5a   : > { %552 = vmatpush1.msra.mxu0 %v505_v7  ;;  %1340 = vmatpush1.msra.mxu1 %v505_v7  ;;  %v489_v23 = vld [vmem:[%s1808_s4 + $0x40] sm:$0xff]  ;;  %v488_v24 = vld [vmem:[%s1808_s4 + $0x38] sm:$0xff]  ;;  %v487_v25 = vld [vmem:[%s1808_s4 + $0x30] sm:$0xff]  ;;  %p1538_p5 = pneg %p1537_p0  ;;  %p1543_p7 = scmp.lt.s32.totalorder %s1541_s19, %s1535_s28 }
  0x5b   : > { %553 = vmatprep.subr.mxu0 %v504_v8  ;;  %1309 = vmatprep.subr.mxu1 %v504_v8  ;;  %v486_v26 = vld [vmem:[%s1808_s4 + $0x28] sm:$0xff]  ;;  %v485_v27 = vld [vmem:[%s1808_s4 + $0x20] sm:$0xff]  ;;  %v484_v28 = vld [vmem:[%s1808_s4 + $0x18] sm:$0xff] }
  0x5c   : > { %554 = vmatpush1.msra.mxu0 %v503_v9  ;;  %1341 = vmatpush1.msra.mxu1 %v503_v9  ;;  %v483_v29 = vld [vmem:[%s1808_s4 + $0x10] sm:$0xff]  ;;  %v482_v30 = vld [vmem:[%s1808_s4 + $0x8] sm:$0xff]  ;;  %v481_v31 = vld [vmem:[%s1808_s4] sm:$0xff]  ;;  %p1544_p1 = por %p1543_p7, %p1542_p12 }
  0x5d   : > { %555 = vmatprep.subr.mxu0 %v502_v10  ;;  %1310 = vmatprep.subr.mxu1 %v502_v10  ;;  %v544_v32 = vld [vmem:[%s1808_s4 + $0x1f8] sm:$0xff]  ;;  %v543_v33 = vld [vmem:[%s1808_s4 + $0x1f0] sm:$0xff]  ;;  %v542_v34 = vld [vmem:[%s1808_s4 + $0x1e8] sm:$0xff] }
  0x5e   : > { %556 = vmatpush1.msra.mxu0 %v501_v11  ;;  %1342 = vmatpush1.msra.mxu1 %v501_v11  ;;  %v541_v35 = vld [vmem:[%s1808_s4 + $0x1e0] sm:$0xff]  ;;  %v540_v36 = vld [vmem:[%s1808_s4 + $0x1d8] sm:$0xff]  ;;  %v539_v37 = vld [vmem:[%s1808_s4 + $0x1d0] sm:$0xff]  ;;  %p1545_p2 = pnand %p1544_p1, %p1538_p5 }
  0x5f   : > { %557 = vmatprep.subr.mxu0 %v500_v12  ;;  %1311 = vmatprep.subr.mxu1 %v500_v12  ;;  %v538_v38 = vld [vmem:[%s1808_s4 + $0x1c8] sm:$0xff]  ;;  %v537_v39 = vld [vmem:[%s1808_s4 + $0x1c0] sm:$0xff]  ;;  %v536_v40 = vld [vmem:[%s1808_s4 + $0x1b8] sm:$0xff] }
  0x60   : > { %558 = vmatpush1.msra.mxu0 %v499_v13  ;;  %1343 = vmatpush1.msra.mxu1 %v499_v13  ;;  %v535_v41 = vld [vmem:[%s1808_s4 + $0x1b0] sm:$0xff]  ;;  %v534_v42 = vld [vmem:[%s1808_s4 + $0x1a8] sm:$0xff]  ;;  %v533_v43 = vld [vmem:[%s1808_s4 + $0x1a0] sm:$0xff] }
  0x61   : > { %559 = vmatprep.subr.mxu0 %v498_v14  ;;  %1312 = vmatprep.subr.mxu1 %v498_v14  ;;  %v532_v44 = vld [vmem:[%s1808_s4 + $0x198] sm:$0xff]  ;;  %v531_v45 = vld [vmem:[%s1808_s4 + $0x190] sm:$0xff]  ;;  %v530_v46 = vld [vmem:[%s1808_s4 + $0x188] sm:$0xff] }
  0x62   : > { %560 = vmatpush1.msra.mxu0 %v497_v15  ;;  %1344 = vmatpush1.msra.mxu1 %v497_v15  ;;  %v529_v47 = vld [vmem:[%s1808_s4 + $0x180] sm:$0xff]  ;;  %v528_v48 = vld [vmem:[%s1808_s4 + $0x178] sm:$0xff]  ;;  %v527_v49 = vld [vmem:[%s1808_s4 + $0x170] sm:$0xff] }
  0x63   : > { %561 = vmatprep.subr.mxu0 %v496_v16  ;;  %1313 = vmatprep.subr.mxu1 %v496_v16  ;;  %v526_v50 = vld [vmem:[%s1808_s4 + $0x168] sm:$0xff]  ;;  %v525_v51 = vld [vmem:[%s1808_s4 + $0x160] sm:$0xff]  ;;  %v524_v52 = vld [vmem:[%s1808_s4 + $0x158] sm:$0xff] }
  0x64   : > { %562 = vmatpush1.msra.mxu0 %v495_v17  ;;  %1345 = vmatpush1.msra.mxu1 %v495_v17  ;;  %v523_v53 = vld [vmem:[%s1808_s4 + $0x150] sm:$0xff]  ;;  %v522_v54 = vld [vmem:[%s1808_s4 + $0x148] sm:$0xff]  ;;  %v521_v55 = vld [vmem:[%s1808_s4 + $0x140] sm:$0xff] }
  0x65   : > { %563 = vmatprep.subr.mxu0 %v494_v18  ;;  %1314 = vmatprep.subr.mxu1 %v494_v18  ;;  %v520_v56 = vld [vmem:[%s1808_s4 + $0x138] sm:$0xff]  ;;  %v519_v57 = vld [vmem:[%s1808_s4 + $0x130] sm:$0xff]  ;;  %v518_v58 = vld [vmem:[%s1808_s4 + $0x128] sm:$0xff] }
  0x66   : > { %564 = vmatpush1.msra.mxu0 %v493_v19  ;;  %1346 = vmatpush1.msra.mxu1 %v493_v19  ;;  %v517_v59 = vld [vmem:[%s1808_s4 + $0x120] sm:$0xff]  ;;  %v516_v60 = vld [vmem:[%s1808_s4 + $0x118] sm:$0xff]  ;;  %v515_v61 = vld [vmem:[%s1808_s4 + $0x110] sm:$0xff] }
  0x67   : > { %565 = vmatprep.subr.mxu0 %v492_v20  ;;  %1315 = vmatprep.subr.mxu1 %v492_v20  ;;  %v514_v62 = vld [vmem:[%s1808_s4 + $0x108] sm:$0xff]  ;;  %v513_v63 = vld [vmem:[%s1808_s4 + $0x100] sm:$0xff]  ;;  %v420_v4 = vld [vmem:[#allocation3 + $0x18] sm:$0xff] }
  0x68   : > { %566 = vmatpush1.msra.mxu0 %v491_v21  ;;  %1347 = vmatpush1.msra.mxu1 %v491_v21  ;;  %v418_v0 = vld [vmem:[#allocation3 + $0x8] sm:$0xff]  ;;  %v417_v2 = vld [vmem:[#allocation3] sm:$0xff]  ;;  %v452_v5 = vld [vmem:[#allocation3 + $0x118] sm:$0xff] }
  0x69   : > { %567 = vmatprep.subr.mxu0 %v490_v22  ;;  %1316 = vmatprep.subr.mxu1 %v490_v22  ;;  %v450_v1 = vld [vmem:[#allocation3 + $0x108] sm:$0xff]  ;;  %v449_v3 = vld [vmem:[#allocation3 + $0x100] sm:$0xff]  ;;  %v419_v6 = vld [vmem:[#allocation3 + $0x10] sm:$0xff] }
  0x6a   : > { %568 = vmatpush1.msra.mxu0 %v489_v23  ;;  %1348 = vmatpush1.msra.mxu1 %v489_v23  ;;  %v451_v7 = vld [vmem:[#allocation3 + $0x110] sm:$0xff]  ;;  %v422_v8 = vld [vmem:[#allocation3 + $0x28] sm:$0xff]  ;;  %v421_v10 = vld [vmem:[#allocation3 + $0x20] sm:$0xff] }
  0x6b   : > { %569 = vmatprep.subr.mxu0 %v488_v24  ;;  %1317 = vmatprep.subr.mxu1 %v488_v24  ;;  %v454_v9 = vld [vmem:[#allocation3 + $0x128] sm:$0xff]  ;;  %v453_v11 = vld [vmem:[#allocation3 + $0x120] sm:$0xff]  ;;  %v424_v12 = vld [vmem:[#allocation3 + $0x38] sm:$0xff] }
  0x6c   : > { %570 = vmatpush1.msra.mxu0 %v487_v25  ;;  %1349 = vmatpush1.msra.mxu1 %v487_v25  ;;  %v456_v13 = vld [vmem:[#allocation3 + $0x138] sm:$0xff]  ;;  %v423_v14 = vld [vmem:[#allocation3 + $0x30] sm:$0xff]  ;;  %v426_v16 = vld [vmem:[#allocation3 + $0x48] sm:$0xff] }
  0x6d   : > { %571 = vmatprep.subr.mxu0 %v486_v26  ;;  %1318 = vmatprep.subr.mxu1 %v486_v26  ;;  %v455_v15 = vld [vmem:[#allocation3 + $0x130] sm:$0xff]  ;;  %v458_v17 = vld [vmem:[#allocation3 + $0x148] sm:$0xff]  ;;  %v425_v18 = vld [vmem:[#allocation3 + $0x40] sm:$0xff] }
  0x6e   : > { %572 = vmatpush1.msra.mxu0 %v485_v27  ;;  %1350 = vmatpush1.msra.mxu1 %v485_v27  ;;  %v457_v19 = vld [vmem:[#allocation3 + $0x140] sm:$0xff]  ;;  %v428_v20 = vld [vmem:[#allocation3 + $0x58] sm:$0xff]  ;;  %v427_v22 = vld [vmem:[#allocation3 + $0x50] sm:$0xff] }
  0x6f   : > { %573 = vmatprep.subr.mxu0 %v484_v28  ;;  %1319 = vmatprep.subr.mxu1 %v484_v28  ;;  %v460_v21 = vld [vmem:[#allocation3 + $0x158] sm:$0xff]  ;;  %v459_v23 = vld [vmem:[#allocation3 + $0x150] sm:$0xff]  ;;  %v430_v24 = vld [vmem:[#allocation3 + $0x68] sm:$0xff] }
  0x70   : > { %574 = vmatpush1.msra.mxu0 %v483_v29  ;;  %1351 = vmatpush1.msra.mxu1 %v483_v29  ;;  %v462_v25 = vld [vmem:[#allocation3 + $0x168] sm:$0xff]  ;;  %v429_v26 = vld [vmem:[#allocation3 + $0x60] sm:$0xff]  ;;  %v432_v28 = vld [vmem:[#allocation3 + $0x78] sm:$0xff] }
  0x71   : > { %575 = vmatprep.subr.mxu0 %v482_v30  ;;  %1320 = vmatprep.subr.mxu1 %v482_v30  ;;  %v461_v27 = vld [vmem:[#allocation3 + $0x160] sm:$0xff]  ;;  %v464_v29 = vld [vmem:[#allocation3 + $0x178] sm:$0xff]  ;;  %v431_v30 = vld [vmem:[#allocation3 + $0x70] sm:$0xff] }
  0x72   : > { %576 = vmatpush1.msra.mxu0 %v481_v31  ;;  %1352 = vmatpush1.msra.mxu1 %v481_v31  ;;  %v463_v31 = vld [vmem:[#allocation3 + $0x170] sm:$0xff] }
  0x73   : > { %577 = vmatprep.subr.mxu0 %v544_v32  ;;  %1321 = vmatprep.subr.mxu1 %v544_v32  ;;  %v434_v32 = vld [vmem:[#allocation3 + $0x88] sm:$0xff] }
  0x74   : > { %578 = vmatpush2.msra.mxu0 %v543_v33  ;;  %1353 = vmatpush2.msra.mxu1 %v543_v33  ;;  %v466_v33 = vld [vmem:[#allocation3 + $0x188] sm:$0xff] }
  0x75   : > { %579 = vmatprep.subr.mxu0 %v542_v34  ;;  %1322 = vmatprep.subr.mxu1 %v542_v34  ;;  %v433_v34 = vld [vmem:[#allocation3 + $0x80] sm:$0xff] }
  0x76   : > { %580 = vmatpush2.msra.mxu0 %v541_v35  ;;  %1354 = vmatpush2.msra.mxu1 %v541_v35  ;;  %v465_v35 = vld [vmem:[#allocation3 + $0x180] sm:$0xff] }
  0x77   : > { %581 = vmatprep.subr.mxu0 %v540_v36  ;;  %1323 = vmatprep.subr.mxu1 %v540_v36  ;;  %v436_v36 = vld [vmem:[#allocation3 + $0x98] sm:$0xff] }
  0x78   : > { %582 = vmatpush2.msra.mxu0 %v539_v37  ;;  %1355 = vmatpush2.msra.mxu1 %v539_v37  ;;  %v468_v37 = vld [vmem:[#allocation3 + $0x198] sm:$0xff] }
  0x79   : > { %583 = vmatprep.subr.mxu0 %v538_v38  ;;  %1324 = vmatprep.subr.mxu1 %v538_v38  ;;  %v435_v38 = vld [vmem:[#allocation3 + $0x90] sm:$0xff] }
  0x7a   : > { %584 = vmatpush2.msra.mxu0 %v537_v39  ;;  %1356 = vmatpush2.msra.mxu1 %v537_v39  ;;  %v467_v39 = vld [vmem:[#allocation3 + $0x190] sm:$0xff] }
  0x7b   : > { %585 = vmatprep.subr.mxu0 %v536_v40  ;;  %1325 = vmatprep.subr.mxu1 %v536_v40  ;;  %v438_v40 = vld [vmem:[#allocation3 + $0xa8] sm:$0xff] }
  0x7c   : > { %586 = vmatpush2.msra.mxu0 %v535_v41  ;;  %1357 = vmatpush2.msra.mxu1 %v535_v41  ;;  %v470_v41 = vld [vmem:[#allocation3 + $0x1a8] sm:$0xff] }
  0x7d   : > { %587 = vmatprep.subr.mxu0 %v534_v42  ;;  %1326 = vmatprep.subr.mxu1 %v534_v42  ;;  %v437_v42 = vld [vmem:[#allocation3 + $0xa0] sm:$0xff] }
  0x7e   : > { %588 = vmatpush2.msra.mxu0 %v533_v43  ;;  %1358 = vmatpush2.msra.mxu1 %v533_v43  ;;  %v469_v43 = vld [vmem:[#allocation3 + $0x1a0] sm:$0xff] }
  0x7f   : > { %589 = vmatprep.subr.mxu0 %v532_v44  ;;  %1327 = vmatprep.subr.mxu1 %v532_v44  ;;  %v440_v44 = vld [vmem:[#allocation3 + $0xb8] sm:$0xff] }
  0x80   : > { %590 = vmatpush2.msra.mxu0 %v531_v45  ;;  %1359 = vmatpush2.msra.mxu1 %v531_v45  ;;  %v472_v45 = vld [vmem:[#allocation3 + $0x1b8] sm:$0xff] }
  0x81   : > { %591 = vmatprep.subr.mxu0 %v530_v46  ;;  %1328 = vmatprep.subr.mxu1 %v530_v46  ;;  %v439_v46 = vld [vmem:[#allocation3 + $0xb0] sm:$0xff] }
  0x82   : > { %592 = vmatpush2.msra.mxu0 %v529_v47  ;;  %1360 = vmatpush2.msra.mxu1 %v529_v47  ;;  %v471_v47 = vld [vmem:[#allocation3 + $0x1b0] sm:$0xff] }
  0x83   : > { %593 = vmatprep.subr.mxu0 %v528_v48  ;;  %1329 = vmatprep.subr.mxu1 %v528_v48  ;;  %v442_v48 = vld [vmem:[#allocation3 + $0xc8] sm:$0xff] }
  0x84   : > { %594 = vmatpush2.msra.mxu0 %v527_v49  ;;  %1361 = vmatpush2.msra.mxu1 %v527_v49  ;;  %v474_v49 = vld [vmem:[#allocation3 + $0x1c8] sm:$0xff] }
  0x85   : > { %595 = vmatprep.subr.mxu0 %v526_v50  ;;  %1330 = vmatprep.subr.mxu1 %v526_v50  ;;  %v441_v50 = vld [vmem:[#allocation3 + $0xc0] sm:$0xff] }
  0x86   : > { %596 = vmatpush2.msra.mxu0 %v525_v51  ;;  %1362 = vmatpush2.msra.mxu1 %v525_v51  ;;  %v473_v51 = vld [vmem:[#allocation3 + $0x1c0] sm:$0xff] }
  0x87   : > { %597 = vmatprep.subr.mxu0 %v524_v52  ;;  %1331 = vmatprep.subr.mxu1 %v524_v52  ;;  %v444_v52 = vld [vmem:[#allocation3 + $0xd8] sm:$0xff] }
  0x88   : > { %598 = vmatpush2.msra.mxu0 %v523_v53  ;;  %1363 = vmatpush2.msra.mxu1 %v523_v53  ;;  %v476_v53 = vld [vmem:[#allocation3 + $0x1d8] sm:$0xff] }
  0x89   : > { %599 = vmatprep.subr.mxu0 %v522_v54  ;;  %1332 = vmatprep.subr.mxu1 %v522_v54  ;;  %v443_v54 = vld [vmem:[#allocation3 + $0xd0] sm:$0xff] }
  0x8a   : > { %600 = vmatpush2.msra.mxu0 %v521_v55  ;;  %1364 = vmatpush2.msra.mxu1 %v521_v55  ;;  %v475_v55 = vld [vmem:[#allocation3 + $0x1d0] sm:$0xff] }
  0x8b   : > { %601 = vmatprep.subr.mxu0 %v520_v56  ;;  %1333 = vmatprep.subr.mxu1 %v520_v56  ;;  %v446_v56 = vld [vmem:[#allocation3 + $0xe8] sm:$0xff] }
  0x8c   : > { %602 = vmatpush2.msra.mxu0 %v519_v57  ;;  %1365 = vmatpush2.msra.mxu1 %v519_v57  ;;  %v478_v57 = vld [vmem:[#allocation3 + $0x1e8] sm:$0xff] }
  0x8d   : > { %603 = vmatprep.subr.mxu0 %v518_v58  ;;  %1334 = vmatprep.subr.mxu1 %v518_v58  ;;  %v445_v58 = vld [vmem:[#allocation3 + $0xe0] sm:$0xff] }
  0x8e   : > { %604 = vmatpush2.msra.mxu0 %v517_v59  ;;  %1366 = vmatpush2.msra.mxu1 %v517_v59  ;;  %v477_v59 = vld [vmem:[#allocation3 + $0x1e0] sm:$0xff] }
  0x8f   : > { %605 = vmatprep.subr.mxu0 %v516_v60  ;;  %1335 = vmatprep.subr.mxu1 %v516_v60  ;;  %v448_v60 = vld [vmem:[#allocation3 + $0xf8] sm:$0xff] }
  0x90   : > { %606 = vmatpush2.msra.mxu0 %v515_v61  ;;  %1367 = vmatpush2.msra.mxu1 %v515_v61  ;;  %v480_v61 = vld [vmem:[#allocation3 + $0x1f8] sm:$0xff] }
  0x91   : > { %607 = vmatprep.subr.mxu0 %v514_v62  ;;  %1336 = vmatprep.subr.mxu1 %v514_v62  ;;  %v447_v62 = vld [vmem:[#allocation3 + $0xf0] sm:$0xff] }
  0x92   : > { %608 = vmatpush2.msra.mxu0 %v513_v63  ;;  %1368 = vmatpush2.msra.mxu1 %v513_v63  ;;  %v479_v63 = vld [vmem:[#allocation3 + $0x1f0] sm:$0xff] }
  0x93   : > { %609 = vmatprep.mubr.f32.mxu0 %v418_v0  ;;  %705 = vmatprep.mubr.f32.mxu1 %v450_v1  ;;  %v999_v0 = vlaneseq }
  0x94   : > { %610 = vmatmul.mubr.f32.vlgmr.msra.gmra.mxu0 %v417_v2  ;;  %706 = vmatmul.mubr.f32.vlgmr.msra.gmra.mxu1 %v449_v3  ;;  %v997_v3 = vld [vmem:[%s250_s25] sm:$0x3] }
  0x95   : > { %615 = vmatprep.mubr.f32.mxu0 %v420_v4  ;;  %711 = vmatprep.mubr.f32.mxu1 %v452_v5  ;;  %v1000_v1 = vshrl.u32 %v999_v0, 7 }
  0x97   : > { %v1001_v2 = vsub.s32 0, %v1000_v1  ;;  %v1005_v4 = vsub.s32 1, %v1000_v1 }
  0x98   : > { %616 = vmatmul.mubr.f32.gmra.mxu0 %v419_v6  ;;  %712 = vmatmul.mubr.f32.gmra.mxu1 %v451_v7 }
  0x99   : > { %621 = vmatprep.mubr.f32.mxu0 %v422_v8  ;;  %717 = vmatprep.mubr.f32.mxu1 %v454_v9  ;;  %v1879_v5 = vrot.slane %v997_v3, %v1001_v2  ;;  %v1881_v6 = vrot.slane %v997_v3, %v1005_v4 }
  0x9c   : > { %622 = vmatmul.mubr.f32.gmra.mxu0 %v421_v10  ;;  %718 = vmatmul.mubr.f32.gmra.mxu1 %v453_v11 }
  0x9d   : > { %627 = vmatprep.mubr.f32.mxu0 %v424_v12  ;;  %723 = vmatprep.mubr.f32.mxu1 %v456_v13 }
  0xa0   : > { %628 = vmatmul.mubr.f32.gmra.mxu0 %v423_v14  ;;  %724 = vmatmul.mubr.f32.gmra.mxu1 %v455_v15 }
  0xa1   : > { %633 = vmatprep.mubr.f32.mxu0 %v426_v16  ;;  %729 = vmatprep.mubr.f32.mxu1 %v458_v17 }
  0xa4   : > { %634 = vmatmul.mubr.f32.gmra.mxu0 %v425_v18  ;;  %730 = vmatmul.mubr.f32.gmra.mxu1 %v457_v19 }
  0xa5   : > { %639 = vmatprep.mubr.f32.mxu0 %v428_v20  ;;  %735 = vmatprep.mubr.f32.mxu1 %v460_v21 }
  0xa8   : > { %640 = vmatmul.mubr.f32.gmra.mxu0 %v427_v22  ;;  %736 = vmatmul.mubr.f32.gmra.mxu1 %v459_v23 }
  0xa9   : > { %645 = vmatprep.mubr.f32.mxu0 %v430_v24  ;;  %741 = vmatprep.mubr.f32.mxu1 %v462_v25 }
  0xac   : > { %646 = vmatmul.mubr.f32.gmra.mxu0 %v429_v26  ;;  %742 = vmatmul.mubr.f32.gmra.mxu1 %v461_v27 }
  0xad   : > { %651 = vmatprep.mubr.f32.mxu0 %v432_v28  ;;  %747 = vmatprep.mubr.f32.mxu1 %v464_v29 }
  0xb0   : > { %652 = vmatmul.mubr.f32.gmra.mxu0 %v431_v30  ;;  %748 = vmatmul.mubr.f32.gmra.mxu1 %v463_v31 }
  0xb1   : > { %657 = vmatprep.mubr.f32.mxu0 %v434_v32  ;;  %753 = vmatprep.mubr.f32.mxu1 %v466_v33 }
  0xb4   : > { %658 = vmatmul.mubr.f32.gmra.mxu0 %v433_v34  ;;  %754 = vmatmul.mubr.f32.gmra.mxu1 %v465_v35 }
  0xb5   : > { %663 = vmatprep.mubr.f32.mxu0 %v436_v36  ;;  %759 = vmatprep.mubr.f32.mxu1 %v468_v37 }
  0xb8   : > { %664 = vmatmul.mubr.f32.gmra.mxu0 %v435_v38  ;;  %760 = vmatmul.mubr.f32.gmra.mxu1 %v467_v39 }
  0xb9   : > { %669 = vmatprep.mubr.f32.mxu0 %v438_v40  ;;  %765 = vmatprep.mubr.f32.mxu1 %v470_v41 }
  0xbc   : > { %670 = vmatmul.mubr.f32.gmra.mxu0 %v437_v42  ;;  %766 = vmatmul.mubr.f32.gmra.mxu1 %v469_v43 }
  0xbd   : > { %675 = vmatprep.mubr.f32.mxu0 %v440_v44  ;;  %771 = vmatprep.mubr.f32.mxu1 %v472_v45 }
  0xc0   : > { %676 = vmatmul.mubr.f32.gmra.mxu0 %v439_v46  ;;  %772 = vmatmul.mubr.f32.gmra.mxu1 %v471_v47 }
  0xc1   : > { %681 = vmatprep.mubr.f32.mxu0 %v442_v48  ;;  %777 = vmatprep.mubr.f32.mxu1 %v474_v49 }
  0xc4   : > { %682 = vmatmul.mubr.f32.gmra.mxu0 %v441_v50  ;;  %778 = vmatmul.mubr.f32.gmra.mxu1 %v473_v51 }
  0xc5   : > { %687 = vmatprep.mubr.f32.mxu0 %v444_v52  ;;  %783 = vmatprep.mubr.f32.mxu1 %v476_v53 }
  0xc8   : > { %688 = vmatmul.mubr.f32.gmra.mxu0 %v443_v54  ;;  %784 = vmatmul.mubr.f32.gmra.mxu1 %v475_v55 }
  0xc9   : > { %693 = vmatprep.mubr.f32.mxu0 %v446_v56  ;;  %789 = vmatprep.mubr.f32.mxu1 %v478_v57 }
  0xcc   : > { %694 = vmatmul.mubr.f32.gmra.mxu0 %v445_v58  ;;  %790 = vmatmul.mubr.f32.gmra.mxu1 %v477_v59 }
  0xcd   : > { %699 = vmatprep.mubr.f32.mxu0 %v448_v60  ;;  %795 = vmatprep.mubr.f32.mxu1 %v480_v61 }
  0xd0   : > { %700 = vmatmul.mubr.f32.gmra.mxu0 %v447_v62  ;;  %796 = vmatmul.mubr.f32.gmra.mxu1 %v479_v63 }
 0x154   : > { %v611_v7 = vpop.f32.mrf.mxu0  ;;  %v707_v8 = vpop.f32.mrf.mxu1 }
 0x155   : > { %v1009_v9 = vadd.f32 %v1879_v5, %v611_v7  ;;  %v1041_v10 = vadd.f32 %v1879_v5, %v707_v8 }
 0x156   : > { %v613_v11 = vpop.f32.mrf.mxu0  ;;  %v709_v12 = vpop.f32.mrf.mxu1 }
 0x157   : > { %1073 = vst [vmem:[%s1887_s29] sm:$0xff] %v1009_v9  ;;  %1105 = vst [vmem:[%s1887_s29 + $0x100] sm:$0xff] %v1041_v10  ;;  %v1010_v13 = vadd.f32 %v1881_v6, %v613_v11  ;;  %v1042_v14 = vadd.f32 %v1881_v6, %v709_v12 }
 0x158   : > { %v617_v15 = vpop.f32.mrf.mxu0  ;;  %v713_v16 = vpop.f32.mrf.mxu1 }
 0x159   : > { %1074 = vst [vmem:[%s1887_s29 + $0x8] sm:$0xff] %v1010_v13  ;;  %1106 = vst [vmem:[%s1887_s29 + $0x108] sm:$0xff] %v1042_v14  ;;  %v1011_v17 = vadd.f32 %v1879_v5, %v617_v15  ;;  %v1043_v18 = vadd.f32 %v1879_v5, %v713_v16 }
 0x15a   : > { %v619_v19 = vpop.f32.mrf.mxu0  ;;  %v715_v20 = vpop.f32.mrf.mxu1 }
 0x15b   : > { %1075 = vst [vmem:[%s1887_s29 + $0x10] sm:$0xff] %v1011_v17  ;;  %1107 = vst [vmem:[%s1887_s29 + $0x110] sm:$0xff] %v1043_v18  ;;  %v1012_v21 = vadd.f32 %v1881_v6, %v619_v19  ;;  %v1044_v22 = vadd.f32 %v1881_v6, %v715_v20 }
 0x15c   : > { %v623_v23 = vpop.f32.mrf.mxu0  ;;  %v719_v24 = vpop.f32.mrf.mxu1 }
 0x15d   : > { %1076 = vst [vmem:[%s1887_s29 + $0x18] sm:$0xff] %v1012_v21  ;;  %1108 = vst [vmem:[%s1887_s29 + $0x118] sm:$0xff] %v1044_v22  ;;  %v1013_v25 = vadd.f32 %v1879_v5, %v623_v23  ;;  %v1045_v26 = vadd.f32 %v1879_v5, %v719_v24 }
 0x15e   : > { %v625_v27 = vpop.f32.mrf.mxu0  ;;  %v721_v28 = vpop.f32.mrf.mxu1 }
 0x15f   : > { %1077 = vst [vmem:[%s1887_s29 + $0x20] sm:$0xff] %v1013_v25  ;;  %1109 = vst [vmem:[%s1887_s29 + $0x120] sm:$0xff] %v1045_v26  ;;  %v1014_v29 = vadd.f32 %v1881_v6, %v625_v27  ;;  %v1046_v30 = vadd.f32 %v1881_v6, %v721_v28 }
 0x160   : > { %v629_v31 = vpop.f32.mrf.mxu0  ;;  %v725_v32 = vpop.f32.mrf.mxu1 }
 0x161   : > { %1078 = vst [vmem:[%s1887_s29 + $0x28] sm:$0xff] %v1014_v29  ;;  %1110 = vst [vmem:[%s1887_s29 + $0x128] sm:$0xff] %v1046_v30  ;;  %v1015_v33 = vadd.f32 %v1879_v5, %v629_v31  ;;  %v1047_v34 = vadd.f32 %v1879_v5, %v725_v32 }
 0x162   : > { %v631_v35 = vpop.f32.mrf.mxu0  ;;  %v727_v36 = vpop.f32.mrf.mxu1 }
 0x163   : > { %1079 = vst [vmem:[%s1887_s29 + $0x30] sm:$0xff] %v1015_v33  ;;  %1111 = vst [vmem:[%s1887_s29 + $0x130] sm:$0xff] %v1047_v34  ;;  %v1016_v37 = vadd.f32 %v1881_v6, %v631_v35  ;;  %v1048_v38 = vadd.f32 %v1881_v6, %v727_v36 }
 0x164   : > { %v635_v39 = vpop.f32.mrf.mxu0  ;;  %v731_v40 = vpop.f32.mrf.mxu1 }
 0x165   : > { %1080 = vst [vmem:[%s1887_s29 + $0x38] sm:$0xff] %v1016_v37  ;;  %1112 = vst [vmem:[%s1887_s29 + $0x138] sm:$0xff] %v1048_v38  ;;  %v1017_v41 = vadd.f32 %v1879_v5, %v635_v39  ;;  %v1049_v42 = vadd.f32 %v1879_v5, %v731_v40 }
 0x166   : > { %v637_v43 = vpop.f32.mrf.mxu0  ;;  %v733_v44 = vpop.f32.mrf.mxu1 }
 0x167   : > { %1081 = vst [vmem:[%s1887_s29 + $0x40] sm:$0xff] %v1017_v41  ;;  %1113 = vst [vmem:[%s1887_s29 + $0x140] sm:$0xff] %v1049_v42  ;;  %v1018_v45 = vadd.f32 %v1881_v6, %v637_v43  ;;  %v1050_v46 = vadd.f32 %v1881_v6, %v733_v44 }
 0x168   : > { %v641_v47 = vpop.f32.mrf.mxu0  ;;  %v737_v48 = vpop.f32.mrf.mxu1 }
 0x169   : > { %1082 = vst [vmem:[%s1887_s29 + $0x48] sm:$0xff] %v1018_v45  ;;  %1114 = vst [vmem:[%s1887_s29 + $0x148] sm:$0xff] %v1050_v46  ;;  %v1019_v49 = vadd.f32 %v1879_v5, %v641_v47  ;;  %v1051_v50 = vadd.f32 %v1879_v5, %v737_v48 }
 0x16a   : > { %v643_v51 = vpop.f32.mrf.mxu0  ;;  %v739_v52 = vpop.f32.mrf.mxu1 }
 0x16b   : > { %1083 = vst [vmem:[%s1887_s29 + $0x50] sm:$0xff] %v1019_v49  ;;  %1115 = vst [vmem:[%s1887_s29 + $0x150] sm:$0xff] %v1051_v50  ;;  %v1020_v53 = vadd.f32 %v1881_v6, %v643_v51  ;;  %v1052_v54 = vadd.f32 %v1881_v6, %v739_v52 }
 0x16c   : > { %v647_v55 = vpop.f32.mrf.mxu0  ;;  %v743_v56 = vpop.f32.mrf.mxu1 }
 0x16d   : > { %1084 = vst [vmem:[%s1887_s29 + $0x58] sm:$0xff] %v1020_v53  ;;  %1116 = vst [vmem:[%s1887_s29 + $0x158] sm:$0xff] %v1052_v54  ;;  %v1021_v57 = vadd.f32 %v1879_v5, %v647_v55  ;;  %v1053_v58 = vadd.f32 %v1879_v5, %v743_v56 }
 0x16e   : > { %v649_v59 = vpop.f32.mrf.mxu0  ;;  %v745_v60 = vpop.f32.mrf.mxu1 }
 0x16f   : > { %1085 = vst [vmem:[%s1887_s29 + $0x60] sm:$0xff] %v1021_v57  ;;  %1117 = vst [vmem:[%s1887_s29 + $0x160] sm:$0xff] %v1053_v58  ;;  %v1022_v61 = vadd.f32 %v1881_v6, %v649_v59  ;;  %v1054_v62 = vadd.f32 %v1881_v6, %v745_v60 }
 0x170   : > { %v653_v63 = vpop.f32.mrf.mxu0  ;;  %v749_v0 = vpop.f32.mrf.mxu1 }
 0x171   : > { %1086 = vst [vmem:[%s1887_s29 + $0x68] sm:$0xff] %v1022_v61  ;;  %1118 = vst [vmem:[%s1887_s29 + $0x168] sm:$0xff] %v1054_v62  ;;  %v1023_v1 = vadd.f32 %v1879_v5, %v653_v63  ;;  %v1055_v2 = vadd.f32 %v1879_v5, %v749_v0 }
 0x172   : > { %v655_v3 = vpop.f32.mrf.mxu0  ;;  %v751_v4 = vpop.f32.mrf.mxu1 }
 0x173   : > { %1087 = vst [vmem:[%s1887_s29 + $0x70] sm:$0xff] %v1023_v1  ;;  %1119 = vst [vmem:[%s1887_s29 + $0x170] sm:$0xff] %v1055_v2  ;;  %v1024_v7 = vadd.f32 %v1881_v6, %v655_v3  ;;  %v1056_v8 = vadd.f32 %v1881_v6, %v751_v4 }
 0x174   : > { %v659_v9 = vpop.f32.mrf.mxu0  ;;  %v755_v10 = vpop.f32.mrf.mxu1 }
 0x175   : > { %1088 = vst [vmem:[%s1887_s29 + $0x78] sm:$0xff] %v1024_v7  ;;  %1120 = vst [vmem:[%s1887_s29 + $0x178] sm:$0xff] %v1056_v8  ;;  %v1025_v11 = vadd.f32 %v1879_v5, %v659_v9  ;;  %v1057_v12 = vadd.f32 %v1879_v5, %v755_v10 }
 0x176   : > { %v661_v13 = vpop.f32.mrf.mxu0  ;;  %v757_v14 = vpop.f32.mrf.mxu1 }
 0x177   : > { %1089 = vst [vmem:[%s1887_s29 + $0x80] sm:$0xff] %v1025_v11  ;;  %1121 = vst [vmem:[%s1887_s29 + $0x180] sm:$0xff] %v1057_v12  ;;  %v1026_v15 = vadd.f32 %v1881_v6, %v661_v13  ;;  %v1058_v16 = vadd.f32 %v1881_v6, %v757_v14 }
 0x178   : > { %v665_v17 = vpop.f32.mrf.mxu0  ;;  %v761_v18 = vpop.f32.mrf.mxu1 }
 0x179   : > { %1090 = vst [vmem:[%s1887_s29 + $0x88] sm:$0xff] %v1026_v15  ;;  %1122 = vst [vmem:[%s1887_s29 + $0x188] sm:$0xff] %v1058_v16  ;;  %v1027_v19 = vadd.f32 %v1879_v5, %v665_v17  ;;  %v1059_v20 = vadd.f32 %v1879_v5, %v761_v18 }
 0x17a   : > { %v667_v21 = vpop.f32.mrf.mxu0  ;;  %v763_v22 = vpop.f32.mrf.mxu1 }
 0x17b   : > { %1091 = vst [vmem:[%s1887_s29 + $0x90] sm:$0xff] %v1027_v19  ;;  %1123 = vst [vmem:[%s1887_s29 + $0x190] sm:$0xff] %v1059_v20  ;;  %v1028_v23 = vadd.f32 %v1881_v6, %v667_v21  ;;  %v1060_v24 = vadd.f32 %v1881_v6, %v763_v22 }
 0x17c   : > { %v671_v25 = vpop.f32.mrf.mxu0  ;;  %v767_v26 = vpop.f32.mrf.mxu1 }
 0x17d   : > { %1092 = vst [vmem:[%s1887_s29 + $0x98] sm:$0xff] %v1028_v23  ;;  %1124 = vst [vmem:[%s1887_s29 + $0x198] sm:$0xff] %v1060_v24  ;;  %v1029_v27 = vadd.f32 %v1879_v5, %v671_v25  ;;  %v1061_v28 = vadd.f32 %v1879_v5, %v767_v26 }
 0x17e   : > { %v673_v29 = vpop.f32.mrf.mxu0  ;;  %v769_v30 = vpop.f32.mrf.mxu1 }
 0x17f   : > { %1093 = vst [vmem:[%s1887_s29 + $0xa0] sm:$0xff] %v1029_v27  ;;  %1125 = vst [vmem:[%s1887_s29 + $0x1a0] sm:$0xff] %v1061_v28  ;;  %v1030_v31 = vadd.f32 %v1881_v6, %v673_v29  ;;  %v1062_v32 = vadd.f32 %v1881_v6, %v769_v30 }
 0x180   : > { %v677_v33 = vpop.f32.mrf.mxu0  ;;  %v773_v34 = vpop.f32.mrf.mxu1 }
 0x181   : > { %1094 = vst [vmem:[%s1887_s29 + $0xa8] sm:$0xff] %v1030_v31  ;;  %1126 = vst [vmem:[%s1887_s29 + $0x1a8] sm:$0xff] %v1062_v32  ;;  %v1031_v35 = vadd.f32 %v1879_v5, %v677_v33  ;;  %v1063_v36 = vadd.f32 %v1879_v5, %v773_v34 }
 0x182   : > { %v679_v37 = vpop.f32.mrf.mxu0  ;;  %v775_v38 = vpop.f32.mrf.mxu1 }
 0x183   : > { %1095 = vst [vmem:[%s1887_s29 + $0xb0] sm:$0xff] %v1031_v35  ;;  %1127 = vst [vmem:[%s1887_s29 + $0x1b0] sm:$0xff] %v1063_v36  ;;  %v1032_v39 = vadd.f32 %v1881_v6, %v679_v37  ;;  %v1064_v40 = vadd.f32 %v1881_v6, %v775_v38 }
 0x184   : > { %v683_v41 = vpop.f32.mrf.mxu0  ;;  %v779_v42 = vpop.f32.mrf.mxu1 }
 0x185   : > { %1096 = vst [vmem:[%s1887_s29 + $0xb8] sm:$0xff] %v1032_v39  ;;  %1128 = vst [vmem:[%s1887_s29 + $0x1b8] sm:$0xff] %v1064_v40  ;;  %v1033_v43 = vadd.f32 %v1879_v5, %v683_v41  ;;  %v1065_v44 = vadd.f32 %v1879_v5, %v779_v42 }
 0x186   : > { %v685_v45 = vpop.f32.mrf.mxu0  ;;  %v781_v46 = vpop.f32.mrf.mxu1 }
 0x187   : > { %1097 = vst [vmem:[%s1887_s29 + $0xc0] sm:$0xff] %v1033_v43  ;;  %1129 = vst [vmem:[%s1887_s29 + $0x1c0] sm:$0xff] %v1065_v44  ;;  %v1034_v47 = vadd.f32 %v1881_v6, %v685_v45  ;;  %v1066_v48 = vadd.f32 %v1881_v6, %v781_v46 }
 0x188   : > { %v689_v49 = vpop.f32.mrf.mxu0  ;;  %v785_v50 = vpop.f32.mrf.mxu1 }
 0x189   : > { %1098 = vst [vmem:[%s1887_s29 + $0xc8] sm:$0xff] %v1034_v47  ;;  %1130 = vst [vmem:[%s1887_s29 + $0x1c8] sm:$0xff] %v1066_v48  ;;  %v1035_v51 = vadd.f32 %v1879_v5, %v689_v49  ;;  %v1067_v52 = vadd.f32 %v1879_v5, %v785_v50 }
 0x18a   : > { %v691_v53 = vpop.f32.mrf.mxu0  ;;  %v787_v54 = vpop.f32.mrf.mxu1 }
 0x18b   : > { %1099 = vst [vmem:[%s1887_s29 + $0xd0] sm:$0xff] %v1035_v51  ;;  %1131 = vst [vmem:[%s1887_s29 + $0x1d0] sm:$0xff] %v1067_v52  ;;  %v1036_v55 = vadd.f32 %v1881_v6, %v691_v53  ;;  %v1068_v56 = vadd.f32 %v1881_v6, %v787_v54 }
 0x18c   : > { %v695_v57 = vpop.f32.mrf.mxu0  ;;  %v791_v58 = vpop.f32.mrf.mxu1 }
 0x18d   : > { %1100 = vst [vmem:[%s1887_s29 + $0xd8] sm:$0xff] %v1036_v55  ;;  %1132 = vst [vmem:[%s1887_s29 + $0x1d8] sm:$0xff] %v1068_v56  ;;  %v1037_v59 = vadd.f32 %v1879_v5, %v695_v57  ;;  %v1069_v60 = vadd.f32 %v1879_v5, %v791_v58 }
 0x18e   : > { %v697_v61 = vpop.f32.mrf.mxu0  ;;  %v793_v62 = vpop.f32.mrf.mxu1 }
 0x18f   : > { %1101 = vst [vmem:[%s1887_s29 + $0xe0] sm:$0xff] %v1037_v59  ;;  %1133 = vst [vmem:[%s1887_s29 + $0x1e0] sm:$0xff] %v1069_v60  ;;  %v1038_v63 = vadd.f32 %v1881_v6, %v697_v61  ;;  %v1070_v0 = vadd.f32 %v1881_v6, %v793_v62 }
 0x190   : > { %v701_v1 = vpop.f32.mrf.mxu0  ;;  %v797_v2 = vpop.f32.mrf.mxu1 }
 0x191   : > { %1102 = vst [vmem:[%s1887_s29 + $0xe8] sm:$0xff] %v1038_v63  ;;  %1134 = vst [vmem:[%s1887_s29 + $0x1e8] sm:$0xff] %v1070_v0  ;;  %v1039_v3 = vadd.f32 %v1879_v5, %v701_v1  ;;  %v1071_v4 = vadd.f32 %v1879_v5, %v797_v2 }
 0x192   : > { %v703_v7 = vpop.f32.mrf.mxu0  ;;  %v799_v8 = vpop.f32.mrf.mxu1 }
 0x193   : > { %1103 = vst [vmem:[%s1887_s29 + $0xf0] sm:$0xff] %v1039_v3  ;;  %1135 = vst [vmem:[%s1887_s29 + $0x1f0] sm:$0xff] %v1071_v4  ;;  %v1040_v9 = vadd.f32 %v1881_v6, %v703_v7  ;;  %v1072_v10 = vadd.f32 %v1881_v6, %v799_v8 }
 0x195   : > { %1104 = vst [vmem:[%s1887_s29 + $0xf8] sm:$0xff] %v1040_v9  ;;  %1136 = vst [vmem:[%s1887_s29 + $0x1f8] sm:$0xff] %v1072_v10 }
 0x196   : > { %1548 = shalt.err (!%p1545_p2)
}
 0x197   : > { %s1549_s6 = scalar_lea.hbm %s2014_s23, 8192  ;;  %s1553_s9 = scalar_lea.hbm %s2072_s3, 24576 }
 0x198   : > { %p1550_p4 = scmp.ne.s32.totalorder %s2014_s23, %s1549_s6  ;;  %p1554_p6 = scmp.lt.s32.totalorder %s2014_s23, %s2072_s3 }
 0x199   : > { %p1555_p3 = scmp.lt.s32.totalorder %s1553_s9, %s1549_s6 }
 0x19a   : > { %p1551_p9 = pnand %p1550_p4, %p2092_p13 }
 0x19b   : > { %p1556_p8 = por %p1555_p3, %p1554_p6 }
 0x19c   : > { %p1552_p11 = pneg %p1551_p9 }
 0x19e   : > { %p1557_p10 = pnand %p1556_p8, %p1552_p11 }
 0x1a0   : > { %1560 = shalt.err (!%p1557_p10)
}
 0x1a1   : > { %s1628_s25 = smov 256   ;;  %s1629_s29 = smov 768  }
 0x1a2   : > { %s1630_s10 = smov 16  }
 0x1a3   : > { %1377 = dma.vmem_to_hbm [thread:$0]  (%p2092_p13), %s2016_s11, 8192, %s2014_s23, %s1138_s30, %s1628_s25, %s1629_s29, %s1630_s10  }
 0x1a4 PF: > { %p1397_p0 = scmp.ge.s32.totalorder %s1619_s17, 2  ;;  %s1169_s15 = sand.u32 1, %s1599_s12  }
 0x1a5   : > { %p2093_p5 = scmp.ne.s32.totalorder %s2084_s27, 0  ;;  %s1170_s22 = scalar_lea.sflag [#allocation5], %s1169_s15 }
 0x1a7   : > { %p1391_p12 = pnand %p1397_p0, %p2093_p5 }
 0x1a9   : > { %p1392_p7 = pneg %p1391_p12 }
 0x1ab   : > { %1594 = dma.done.wait (%p1392_p7), %s1170_s22, 8192  }
 0x1ac   : > { %1596 = vsyncadd (%p1392_p7), %s1170_s22, 4294959104  ;;  %s20_s17 = sadd.s32 1, %s1619_s17   ;;  %s2094_s12 = smov %s1603_s13 }
 0x1ad   : > { %p17_p1 = scmp.ge.s32.totalorder %s20_s17, 5   ;;  %s2095_s13 = smov %s1607_s14 }
 0x1ae   : > { %s2096_s14 = smov %s1701_s24  ;;  %s2097_s15 = smov %s1615_s16 }
 0x1af   : > { %s2098_s16 = smov %s2100_s18  ;;  %19 = sbr.rel (!%p17_p1) target bundleno = 9 (0x9), region = 102 }
 0x1b4   :  { %1175 = vsyncpa [#allocation4], 1 }
 0x1b5   :  { %1177 = vsyncpa [#allocation4 + $0x1], 1 }
 0x1b6   :  { %1178 = vsyncpa [#allocation7], 1 }
 0x1b7   :  { %1180 = vsyncpa [#allocation7 + $0x1], 1 }
 0x1b8   :  { %1181 = vsyncpa [#allocation5], 1 }
 0x1b9   :  { %1183 = vsyncpa [#allocation5 + $0x1], 1 }

</bundles_post_ra>
